<compile_context>
chip_gen: v7x
topology: tpu7x:2x2x1
jax: 0.10.0
libtpu: 0.0.40
codegen_flags: <defaults>
</compile_context>

<pallas_src>
import functools

import jax
import jax.numpy as jnp
from jax import lax
from jax.experimental import pallas as pl
from jax.experimental.pallas import tpu as pltpu


def _round_up(a, b):
    return -(-a // b) * b


@functools.lru_cache(maxsize=None)
def _buffered1_supported():
    """One-time probe: does BlockSpec(pipeline_mode=pl.Buffered(1)) lower & run?"""
    try:
        spec = pl.BlockSpec((8, 128), lambda i: (0, 0),
                            pipeline_mode=pl.Buffered(1))

        def _k(a_ref, o_ref):
            o_ref[...] = a_ref[...] + 1.0

        f = pl.pallas_call(
            _k,
            out_shape=jax.ShapeDtypeStruct((16, 128), jnp.float32),
            grid=(2,),
            in_specs=[spec],
            out_specs=pl.BlockSpec((8, 128), lambda i: (i, 0)),
        )
        jax.block_until_ready(f(jnp.zeros((8, 128), jnp.float32)))
        return True
    except Exception:
        return False


def _vmem_limit_bytes(requested=None):
    """Per-generation VMEM limit: leave ~16 MiB headroom, cap at 110 MiB."""
    try:
        cap = int(pltpu.get_tpu_info().vmem_capacity_bytes)
    except Exception:
        cap = 128 * 1024 * 1024
    limit = min(cap - 16 * 1024 * 1024, 110 * 1024 * 1024)
    limit = max(limit, 32 * 1024 * 1024)
    if requested is not None:
        limit = min(limit, int(requested))
    return limit


def _pick_tm(M, H, N, x_bytes, w_bytes, vmem_limit, align, tm_max, weight_bufs):
    """Row-tile size from the per-grid-step VMEM live set."""
    # Weights + biases resident for the whole grid (1 buffer with Buffered(1),
    # 2 with the default pipeline).
    resident = weight_bufs * (2 * H * N * w_bytes + (H + N) * 4)
    budget = vmem_limit - resident - (6 << 20)          # Mosaic scratch headroom
    if budget < (1 << 20):
        raise NotImplementedError(
            "W_enc/W_dec do not fit the resident-weight VMEM budget. "
            "TODO(synk): streaming-weights grid axis not implemented.")
    # Per-row cost of one step: f32 top-k intermediates (pre_acts, work,
    # latents ~ 3*N*4 B) + double-buffered x / latents / x_hat tiles.
    per_row = 3 * N * 4 + 2 * (2 * H + N) * x_bytes
    tm = budget // per_row
    tm = min(int(tm), int(tm_max), _round_up(M, align))
    if M > align:
        # Keep >= 2 grid steps so "parallel" can shard rows over 2 TCs (v7x).
        tm = min(tm, _round_up(-(-M // 2), align))
    tm = max(align, (int(tm) // align) * align)
    return int(tm)


def _topk_sae_kernel(k, x_ref, wenc_ref, wdec_ref, encb_ref, preb_ref,
                     lat_ref, xhat_ref):
    # ---- encoder: x @ W_enc + enc_bias  (pre_bias folded in the wrapper) ----
    pre_acts = jnp.dot(x_ref[...].astype(wenc_ref.dtype), wenc_ref[...],
                       preferred_element_type=jnp.float32) + encb_ref[...]

    # ---- top-k threshold: k iterations, one XLU row-max each, no mask ----
    # TODO(synk): exact tie-breaking (torch.topk keeps exactly k) would need a
    # per-iteration first-index select; ">= k-th value" semantics used instead.
    neg_inf = jnp.float32(-jnp.inf)

    def body(_, carry):
        work, _ = carry
        row_max = jnp.max(work, axis=-1, keepdims=True)
        return jnp.where(work == row_max, neg_inf, work), row_max

    thresh0 = jnp.full((pre_acts.shape[0], 1), neg_inf, jnp.float32)
    _, thresh = lax.fori_loop(0, k, body, (pre_acts, thresh0),
                              unroll=True if k <= 8 else 8)
    latents = jnp.where(pre_acts >= thresh, pre_acts, jnp.float32(0.0))

    # Single cast: the stored latents are exactly what the decoder consumes.
    lat_q = latents.astype(lat_ref.dtype)
    lat_ref[...] = lat_q

    # ---- decoder: latents @ W_dec + pre_bias ----
    xhat = jnp.dot(lat_q.astype(wdec_ref.dtype), wdec_ref[...],
                   preferred_element_type=jnp.float32) + preb_ref[...]
    xhat_ref[...] = xhat.astype(xhat_ref.dtype)


def topk_sae_forward(x, wenc_mm, wdec_mm, pre_bias, latent_bias, *, k,
                     tm=256, vmem_limit_bytes=None):
    """x: [B, L, H]; wenc_mm: [H, N]; wdec_mm: [N, H] -> (latents, x_hat)."""
    B, L, H = x.shape
    N = wenc_mm.shape[1]
    assert 0 < k <= N, "k must satisfy 0 < k <= latent_size"
    M = B * L

    vmem_limit = _vmem_limit_bytes(vmem_limit_bytes)
    resident = _buffered1_supported()
    res_kw = {"pipeline_mode": pl.Buffered(1)} if resident else {}
    weight_bufs = 1 if resident else 2

    align = 16 if x.dtype == jnp.bfloat16 else 8
    tm_eff = _pick_tm(M, H, N,
                      jnp.dtype(x.dtype).itemsize,
                      jnp.dtype(wenc_mm.dtype).itemsize,
                      vmem_limit, align, tm, weight_bufs)
    grid_m = pl.cdiv(M, tm_eff)

    xf = x.reshape(M, H)                       # no padding copy; partial last tile
    preb = pre_bias.astype(jnp.float32).reshape(1, H)
    latb = latent_bias.astype(jnp.float32).reshape(1, N)
    # Fold pre_bias into the encoder bias once (amortized over the batch):
    #   (x - pre_bias) @ W_enc + latent_bias == x @ W_enc + enc_bias
    encb = latb - jnp.dot(preb, wenc_mm, preferred_element_type=jnp.float32)

    kernel = functools.partial(_topk_sae_kernel, k)

    grid_spec = pltpu.PrefetchScalarGridSpec(
        num_scalar_prefetch=0,
        grid=(grid_m,),
        in_specs=[
            pl.BlockSpec((tm_eff, H), lambda i: (i, 0)),           # x tile
            pl.BlockSpec((H, N), lambda i: (0, 0), **res_kw),      # W_enc (resident)
            pl.BlockSpec((N, H), lambda i: (0, 0), **res_kw),      # W_dec (resident)
            pl.BlockSpec((1, N), lambda i: (0, 0), **res_kw),      # enc bias
            pl.BlockSpec((1, H), lambda i: (0, 0), **res_kw),      # pre bias
        ],
        out_specs=(
            pl.BlockSpec((tm_eff, N), lambda i: (i, 0)),           # latents
            pl.BlockSpec((tm_eff, H), lambda i: (i, 0)),           # x_hat
        ),
    )

    latents, xhat = pl.pallas_call(
        kernel,
        out_shape=(jax.ShapeDtypeStruct((M, N), x.dtype),
                   jax.ShapeDtypeStruct((M, H), x.dtype)),
        grid_spec=grid_spec,
        compiler_params=pltpu.CompilerParams(
            dimension_semantics=("parallel",),
            vmem_limit_bytes=vmem_limit),
    )(xf, wenc_mm, wdec_mm, encb, preb)

    return latents.reshape(B, L, N), xhat.reshape(B, L, H)


if __name__ == "__main__":
    # Small but lane-dense shapes consistent with the module:
    # x is [batch, max_length, hidden]; N latents, top-k K.
    B, L, H, N, K = 2, 8, 128, 256, 4

    key = jax.random.PRNGKey(0)
    kx, kw, kb1, kb2 = jax.random.split(key, 4)
    x = jax.random.normal(kx, (B, L, H), dtype=jnp.float32)

    # Parameters mirroring the module (decoder tied to encoder). The torch
    # __init__ zeros the biases; nonzero values are used here to exercise the
    # folded-bias path.
    w_enc = jax.random.normal(kw, (N, H), dtype=jnp.float32) * 0.05  # torch [latent, hidden]
    wenc_mm = w_enc.T          # [H, N]  (encoder.weight.T, matmul-ready)
    wdec_mm = w_enc            # [N, H]  (decoder.weight.T == encoder.weight)
    pre_bias = 0.1 * jax.random.normal(kb1, (H,), dtype=jnp.float32)
    latent_bias = 0.1 * jax.random.normal(kb2, (N,), dtype=jnp.float32)

    latents, x_hat = topk_sae_forward(
        x, wenc_mm, wdec_mm, pre_bias, latent_bias, k=K)
    jax.block_until_ready((latents, x_hat))
    assert latents.shape == (B, L, N) and x_hat.shape == (B, L, H)

    # ---- correctness vs a pure-JAX reference (random f32 => no ties) ----
    pre = (x - pre_bias) @ wenc_mm + latent_bias
    kth = jnp.sort(pre, axis=-1)[..., -K][..., None]
    lat_ref = jnp.where(pre >= kth, pre, 0.0)
    xh_ref = lat_ref @ wdec_mm + pre_bias

    nnz = (latents != 0).sum(axis=-1)
    assert int(nnz.min()) == K and int(nnz.max()) == K, "wrong sparsity"
    assert bool(jnp.allclose(latents, lat_ref, atol=1e-3)), "latents mismatch"
    assert bool(jnp.allclose(x_hat, xh_ref, atol=1e-3)), "x_hat mismatch"
    # Decoding the kernel's own latents reproduces the kernel's x_hat.
    assert bool(jnp.allclose(x_hat, latents @ wdec_mm + pre_bias, atol=1e-3))

    # ---- ragged row count: exercises the no-pad partial last tile ----
    lat_r, xh_r = topk_sae_forward(
        x[:1, :5], wenc_mm, wdec_mm, pre_bias, latent_bias, k=K)
    jax.block_until_ready((lat_r, xh_r))
    assert lat_r.shape == (1, 5, N) and xh_r.shape == (1, 5, H)
    assert bool(jnp.allclose(lat_r, lat_ref[:1, :5], atol=1e-3))
    assert bool(jnp.allclose(xh_r, xh_ref[:1, :5], atol=1e-3))

    # ---- bf16 smoke test: weights feed the MXU natively in bf16, and the
    # stored latents are exactly what the decoder consumed ----
    lat_b, xh_b = topk_sae_forward(
        x.astype(jnp.bfloat16), wenc_mm.astype(jnp.bfloat16),
        wdec_mm.astype(jnp.bfloat16), pre_bias, latent_bias, k=K)
    jax.block_until_ready((lat_b, xh_b))
    assert lat_b.dtype == jnp.bfloat16 and xh_b.dtype == jnp.bfloat16
    assert bool(jnp.isfinite(xh_b.astype(jnp.float32)).all())
    xh_b_ref = lat_b.astype(jnp.float32) @ wdec_mm + pre_bias
    assert bool(jnp.allclose(xh_b.astype(jnp.float32), xh_b_ref, atol=0.05))

    print("KERNEL_OK")
</pallas_src>

<mosaic_0001>
module attributes {stable_mosaic.version = 11 : i64} {
  func.func @_k(%arg0: i32, %arg1: memref<8x128xf32, #tpu.memory_space<vmem>>, %arg2: memref<8x128xf32, #tpu.memory_space<vmem>>) attributes {dimension_semantics = [#tpu.dimension_semantics<arbitrary>], iteration_bounds = array<i64: 2>, scalar_prefetch = 0 : i64, scratch_operands = 0 : i64, tpu.core_type = #tpu.core_type<tc>, window_params = [{pipeline_mode = #tpu.pipeline_mode<synchronous>, transform_indices = @transform_0, window_bounds = array<i64: 8, 128>}, {transform_indices = @transform_1, window_bounds = array<i64: 8, 128>}]} {
    %c0 = arith.constant 0 : index
    %c0_0 = arith.constant 0 : index
    %0 = vector.load %arg1[%c0, %c0_0] : memref<8x128xf32, #tpu.memory_space<vmem>>, vector<8x128xf32>
    %cst = arith.constant 1.000000e+00 : f32
    %1 = vector.broadcast %cst : f32 to vector<8x128xf32>
    %2 = arith.addf %0, %1 : vector<8x128xf32>
    %c0_1 = arith.constant 0 : index
    %c0_2 = arith.constant 0 : index
    %3 = vector.load %arg2[%c0_1, %c0_2] : memref<8x128xf32, #tpu.memory_space<vmem>>, vector<8x128xf32>
    tpu.vector_store %arg2[%c0_1, %c0_2], %2 {strides = array<i32>} : memref<8x128xf32, #tpu.memory_space<vmem>>, vector<8x128xf32>,
    return
  }
  func.func @transform_0(%arg0: i32) -> (i32, i32) {
    %c0_i32 = arith.constant 0 : i32
    %c0_i32_0 = arith.constant 0 : i32
    %c0_i32_1 = arith.constant 0 : i32
    return %c0_i32, %c0_i32_0 : i32, i32
  }
  func.func @transform_1(%arg0: i32) -> (i32, i32) {
    %c0_i32 = arith.constant 0 : i32
    %c0_i32_0 = arith.constant 0 : i32
    return %arg0, %c0_i32 : i32, i32
  }
}

module attributes {stable_mosaic.version = 11 : i64} {
  func.func @_topk_sae_kernel(%arg0: i32, %arg1: memref<8x128xf32, #tpu.memory_space<vmem>>, %arg2: memref<128x256xf32, #tpu.memory_space<vmem>>, %arg3: memref<256x128xf32, #tpu.memory_space<vmem>>, %arg4: memref<1x256xf32, #tpu.memory_space<vmem>>, %arg5: memref<1x128xf32, #tpu.memory_space<vmem>>, %arg6: memref<8x256xf32, #tpu.memory_space<vmem>>, %arg7: memref<8x128xf32, #tpu.memory_space<vmem>>) attributes {dimension_semantics = [#tpu.dimension_semantics<parallel>], iteration_bounds = array<i64: 2>, scalar_prefetch = 0 : i64, scratch_operands = 0 : i64, tpu.core_type = #tpu.core_type<tc>, window_params = [{transform_indices = @transform_0, window_bounds = array<i64: 8, 128>}, {pipeline_mode = #tpu.pipeline_mode<synchronous>, transform_indices = @transform_1, window_bounds = array<i64: 128, 256>}, {pipeline_mode = #tpu.pipeline_mode<synchronous>, transform_indices = @transform_2, window_bounds = array<i64: 256, 128>}, {pipeline_mode = #tpu.pipeline_mode<synchronous>, transform_indices = @transform_3, window_bounds = array<i64: 1, 256>}, {pipeline_mode = #tpu.pipeline_mode<synchronous>, transform_indices = @transform_4, window_bounds = array<i64: 1, 128>}, {transform_indices = @transform_5, window_bounds = array<i64: 8, 256>}, {transform_indices = @transform_6, window_bounds = array<i64: 8, 128>}]} {
    %c0 = arith.constant 0 : index
    %c0_0 = arith.constant 0 : index
    %0 = vector.load %arg1[%c0, %c0_0] : memref<8x128xf32, #tpu.memory_space<vmem>>, vector<8x128xf32>
    %c0_1 = arith.constant 0 : index
    %c0_2 = arith.constant 0 : index
    %1 = vector.load %arg2[%c0_1, %c0_2] : memref<128x256xf32, #tpu.memory_space<vmem>>, vector<128x256xf32>
    %cst = arith.constant dense<0.000000e+00> : vector<8x256xf32>
    %2 = tpu.matmul %0, %1, %cst {dimension_numbers = #tpu.dot_dimension_numbers<[1], [0], [0], [1], [0, 0, 1, 1], [], []>} : vector<8x128xf32>, vector<128x256xf32>, vector<8x256xf32> -> vector<8x256xf32>
    %c0_3 = arith.constant 0 : index
    %c0_4 = arith.constant 0 : index
    %3 = vector.load %arg4[%c0_3, %c0_4] : memref<1x256xf32, #tpu.memory_space<vmem>>, vector<1x256xf32>
    %4 = vector.broadcast %3 : vector<1x256xf32> to vector<8x256xf32>
    %5 = arith.addf %2, %4 : vector<8x256xf32>
    %cst_5 = arith.constant 0xFF800000 : f32
    %6 = vector.broadcast %cst_5 : f32 to vector<8x1xf32>
    %cst_6 = arith.constant 0xFF800000 : f32
    %c0_i32 = arith.constant 0 : i32
    %cst_7 = arith.constant dense<0xFF800000> : vector<8xf32>
    %7 = vector.multi_reduction <maximumf>, %5, %cst_7 [1] : vector<8x256xf32> to vector<8xf32>
    %8 = vector.shape_cast %7 : vector<8xf32> to vector<8x1xf32>
    %9 = vector.broadcast %8 : vector<8x1xf32> to vector<8x256xf32>
    %10 = arith.cmpf oeq, %5, %9 : vector<8x256xf32>
    %11 = vector.broadcast %cst_6 : f32 to vector<8x256xf32>
    %12 = arith.select %10, %11, %5 : vector<8x256xi1>, vector<8x256xf32>
    %c1_i32 = arith.constant 1 : i32
    %cst_8 = arith.constant dense<0xFF800000> : vector<8xf32>
    %13 = vector.multi_reduction <maximumf>, %12, %cst_8 [1] : vector<8x256xf32> to vector<8xf32>
    %14 = vector.shape_cast %13 : vector<8xf32> to vector<8x1xf32>
    %15 = vector.broadcast %14 : vector<8x1xf32> to vector<8x256xf32>
    %16 = arith.cmpf oeq, %12, %15 : vector<8x256xf32>
    %17 = vector.broadcast %cst_6 : f32 to vector<8x256xf32>
    %18 = arith.select %16, %17, %12 : vector<8x256xi1>, vector<8x256xf32>
    %c2_i32 = arith.constant 2 : i32
    %cst_9 = arith.constant dense<0xFF800000> : vector<8xf32>
    %19 = vector.multi_reduction <maximumf>, %18, %cst_9 [1] : vector<8x256xf32> to vector<8xf32>
    %20 = vector.shape_cast %19 : vector<8xf32> to vector<8x1xf32>
    %21 = vector.broadcast %20 : vector<8x1xf32> to vector<8x256xf32>
    %22 = arith.cmpf oeq, %18, %21 : vector<8x256xf32>
    %23 = vector.broadcast %cst_6 : f32 to vector<8x256xf32>
    %24 = arith.select %22, %23, %18 : vector<8x256xi1>, vector<8x256xf32>
    %c3_i32 = arith.constant 3 : i32
    %cst_10 = arith.constant dense<0xFF800000> : vector<8xf32>
    %25 = vector.multi_reduction <maximumf>, %24, %cst_10 [1] : vector<8x256xf32> to vector<8xf32>
    %26 = vector.shape_cast %25 : vector<8xf32> to vector<8x1xf32>
    %27 = vector.broadcast %26 : vector<8x1xf32> to vector<8x256xf32>
    %28 = arith.cmpf oeq, %24, %27 : vector<8x256xf32>
    %29 = vector.broadcast %cst_6 : f32 to vector<8x256xf32>
    %30 = arith.select %28, %29, %24 : vector<8x256xi1>, vector<8x256xf32>
    %31 = vector.broadcast %26 : vector<8x1xf32> to vector<8x256xf32>
    %32 = arith.cmpf oge, %5, %31 : vector<8x256xf32>
    %cst_11 = arith.constant 0.000000e+00 : f32
    %33 = vector.broadcast %cst_11 : f32 to vector<8x256xf32>
    %34 = arith.select %32, %5, %33 : vector<8x256xi1>, vector<8x256xf32>
    %c0_12 = arith.constant 0 : index
    %c0_13 = arith.constant 0 : index
    %35 = vector.load %arg6[%c0_12, %c0_13] : memref<8x256xf32, #tpu.memory_space<vmem>>, vector<8x256xf32>
    tpu.vector_store %arg6[%c0_12, %c0_13], %34 {strides = array<i32>} : memref<8x256xf32, #tpu.memory_space<vmem>>, vector<8x256xf32>,
    %c0_14 = arith.constant 0 : index
    %c0_15 = arith.constant 0 : index
    %36 = vector.load %arg3[%c0_14, %c0_15] : memref<256x128xf32, #tpu.memory_space<vmem>>, vector<256x128xf32>
    %cst_16 = arith.constant dense<0.000000e+00> : vector<8x128xf32>
    %37 = tpu.matmul %34, %36, %cst_16 {dimension_numbers = #tpu.dot_dimension_numbers<[1], [0], [0], [1], [0, 0, 1, 1], [], []>} : vector<8x256xf32>, vector<256x128xf32>, vector<8x128xf32> -> vector<8x128xf32>
    %c0_17 = arith.constant 0 : index
    %c0_18 = arith.constant 0 : index
    %38 = vector.load %arg5[%c0_17, %c0_18] : memref<1x128xf32, #tpu.memory_space<vmem>>, vector<1x128xf32>
    %39 = vector.broadcast %38 : vector<1x128xf32> to vector<8x128xf32>
    %40 = arith.addf %37, %39 : vector<8x128xf32>
    %c0_19 = arith.constant 0 : index
    %c0_20 = arith.constant 0 : index
    %41 = vector.load %arg7[%c0_19, %c0_20] : memref<8x128xf32, #tpu.memory_space<vmem>>, vector<8x128xf32>
    tpu.vector_store %arg7[%c0_19, %c0_20], %40 {strides = array<i32>} : memref<8x128xf32, #tpu.memory_space<vmem>>, vector<8x128xf32>,
    return
  }
  func.func @transform_0(%arg0: i32) -> (i32, i32) {
    %c0_i32 = arith.constant 0 : i32
    %c0_i32_0 = arith.constant 0 : i32
    return %arg0, %c0_i32 : i32, i32
  }
  func.func @transform_1(%arg0: i32) -> (i32, i32) {
    %c0_i32 = arith.constant 0 : i32
    %c0_i32_0 = arith.constant 0 : i32
    %c0_i32_1 = arith.constant 0 : i32
    return %c0_i32, %c0_i32_0 : i32, i32
  }
  func.func @transform_2(%arg0: i32) -> (i32, i32) {
    %c0_i32 = arith.constant 0 : i32
    %c0_i32_0 = arith.constant 0 : i32
    %c0_i32_1 = arith.constant 0 : i32
    return %c0_i32, %c0_i32_0 : i32, i32
  }
  func.func @transform_3(%arg0: i32) -> (i32, i32) {
    %c0_i32 = arith.constant 0 : i32
    %c0_i32_0 = arith.constant 0 : i32
    %c0_i32_1 = arith.constant 0 : i32
    return %c0_i32, %c0_i32_0 : i32, i32
  }
  func.func @transform_4(%arg0: i32) -> (i32, i32) {
    %c0_i32 = arith.constant 0 : i32
    %c0_i32_0 = arith.constant 0 : i32
    %c0_i32_1 = arith.constant 0 : i32
    return %c0_i32, %c0_i32_0 : i32, i32
  }
  func.func @transform_5(%arg0: i32) -> (i32, i32) {
    %c0_i32 = arith.constant 0 : i32
    %c0_i32_0 = arith.constant 0 : i32
    return %arg0, %c0_i32 : i32, i32
  }
  func.func @transform_6(%arg0: i32) -> (i32, i32) {
    %c0_i32 = arith.constant 0 : i32
    %c0_i32_0 = arith.constant 0 : i32
    return %arg0, %c0_i32 : i32, i32
  }
}

</mosaic_0001>

<bundles_post_ra>
// kernel: tpu_custom_call.1
= control target key start
LH: loop header
LB: loop body
LE: loop exit
PB: predicated region body
PF: predicated region fallthrough
CT: control target
= control target key end

     0   :  { %6 = vsyncpa [#allocation3], 0  ;;  %s482_s0 = inlined_call_operand.hbm [shape: f32[8,128], index: 0, kind: input, shape index: {}]   ;;  %s483_s1 = inlined_call_operand.hbm [shape: f32[16,128], index: 1, kind: output, shape index: {}]  }
   0x1   :  { %7 = vsyncpa [#allocation4], 0 }
   0x2   :  { %9 = vsyncpa [#allocation4 + $0x1], 0  ;;  %s352_s6 = smov 0   ;;  %s354_s7 = smov 0  }
   0x3   :  { %s356_s8 = smov 0   ;;  %s358_s9 = smov 0  }
   0x4 LB: > { %s373_s10 = sadd.s32 4294967295, %s338_s9   ;;  %s184_s11 = sadd.s32 4294967294, %s338_s9   ;;  %s338_s9 = sphi %s358_s9, %s499_s9   ;;  %s334_s8 = sphi %s356_s8, %s498_s8   ;;  %s330_s7 = sphi %s354_s7, %s497_s7   ;;  %s326_s6 = sphi %s352_s6, %s496_s6  }
   0x5   : > { %s377_s12 = sadd.s32 1, %s338_s9   ;;  %s43_s13 = sadd.s32 1, %s334_s8 }
   0x6   : > { %s40_s14 = ssub.s32 %s338_s9, %s377_s12  ;;  %p53_p0 = scmp.ne.s32.totalorder %s334_s8, %s330_s7 }
   0x7   : > { %p41_p1 = scmp.eq.s32.totalorder %s40_s14, 0  ;;  %p54_p2 = scmp.eq.s32.totalorder %s373_s10, 1 }
   0x8   : > { %p59_p3 = scmp.ne.s32.totalorder %s330_s7, %s326_s6  ;;  %p60_p4 = scmp.eq.s32.totalorder %s184_s11, 1 }
   0x9   : > { %s388_s15 = scalar_select %p41_p1, %s334_s8, %s43_s13  }
   0xa   : > { %p390_p5 = por %p54_p2, %p53_p0  ;;  %p394_p6 = por %p60_p4, %p59_p3 }
   0xb   : > { %p185_p7 = scmp.ge.s32.totalorder %s338_s9, 1  ;;  %p67_p8 = scmp.lt.s32.totalorder %s338_s9, 3 }
   0xc   : > { %s487_s16 = scalar_select %p390_p5, 1, 0 }
   0xd   : > { %s488_s17 = scalar_select %p394_p6, 1, 0 }
   0xe   : > { %p484_p9 = scmp.eq.s32.totalorder %s373_s10, 0  ;;  %p401_p10 = pnand %p185_p7, %p67_p8 }
   0xf   : > { %s340_s19 = smov [#allocation2]   ;;  %s244_s24 = scalar_lea.hbm %s482_s0, 128 }
  0x10   : > { %s489_s18 = scalar_select %p401_p10, 1, 0 }
  0x11   : > { %s80_s20 = sshll.u32 %s340_s19, 4  ;;  %p200_p11 = pneg %p401_p10  ;;  %s81_s20 = int_to_ptr.vmem [resolvable:$true] %s80_s20 }
  0x12   : > { %p245_p13 = scmp.ne.s32.totalorder %s482_s0, %s244_s24  ;;  %p251_p3 = scmp.lt.u32.totalorder %s244_s24, %s482_s0 }
  0x13   : > { %p409_p12 = pnand %p484_p9, %p200_p11 }
  0x15   : > { %p246_p0 = pneg %p409_p12 }
  0x17   : > { %p247_p1 = pnand %p246_p0, %p245_p13 }
  0x19   : > { %p248_p2 = pneg %p247_p1 }
  0x1b   : > { %p253_p4 = pnand %p251_p3, %p248_p2 }
  0x1d   : > { %256 = shalt.err (!%p253_p4)
}
  0x1e   : > { %s257_s29 = scalar_lea.vmem %s81_s20, 128  ;;  %p265_p9 = scmp.lt.s32.totalorder %s81_s20, %s81_s20 }
  0x1f   : > { %p258_p7 = scmp.ne.s32.totalorder %s81_s20, %s257_s29  ;;  %p266_p6 = scmp.lt.s32.totalorder %s257_s29, %s257_s29 }
  0x21   : > { %p260_p8 = pnand %p258_p7, %p246_p0  ;;  %p267_p5 = por %p266_p6, %p265_p9 }
  0x23   : > { %p261_p11 = pneg %p260_p8 }
  0x25   : > { %p268_p10 = pnand %p267_p5, %p261_p11 }
  0x27   : > { %271 = shalt.err (!%p268_p10)
}
  0x28   : > { %203 = dma.hbm_to_vmem [thread:$0]  (!%p409_p12), %s482_s0, 128, %s81_s20, [#allocation3]  }
  0x29   : > { %p491_p13 = scmp.ne.s32.totalorder %s489_s18, 0 }
  0x2a   : > { %p492_p1 = scmp.eq.s32.totalorder (!%p491_p13), %s373_s10, 0 }
  0x2b   : > { %93 = sbr.rel (%p491_p13) target bundleno = 77 (0x4d), region = 24 }
  0x32   : > { %317 = dma.done.wait (%p492_p1), [#allocation3], 128   ;;  %p493_p0 = pmov %p492_p1 }
  0x33   : > { %s105_s3 = sand.u32 1, %s330_s7   ;;  %s191_s13 = sshll.u32 %s373_s10, 7  ;;  %v108_v0 = vld [vmem:[#allocation2] sm:$0xff] }
  0x34   : > { %319 = vsyncadd (%p493_p0), [#allocation3], 4294967168  ;;  %s189_s4 = sshll.u32 %s105_s3, 3  ;;  %v109_v1 = vadd.f32 1.0, %v108_v0  ;;  %s442_s19 = scalar_lea.hbm %s483_s1, %s191_s13 }
  0x35   : > { %s107_s5 = scalar_lea.vmem [#allocation5], %s189_s4  ;;  %s112_s20 = scalar_lea.sflag [#allocation4], %s105_s3 }
  0x36   : > { %s125_s11 = sshll.u32 %s107_s5, 4  ;;  %110 = vst [vmem:[%s107_s5] sm:$0xff] %v109_v1  ;;  %p494_p6 = scmp.ne.s32.totalorder %s487_s16, 0  ;;  %s437_s11 = int_to_ptr.vmem [resolvable:$true] %s125_s11 }
  0x37   : > { %s272_s21 = scalar_lea.vmem %s437_s11, 128  ;;  %s341_s10 = smov [#allocation5]  }
  0x38   : > { %p273_p5 = scmp.ne.s32.totalorder %s437_s11, %s272_s21  ;;  %s276_s22 = sshll.u32 %s341_s10, 4  ;;  %s277_s22 = int_to_ptr.vmem [resolvable:$false] %s276_s22 }
  0x39   : > { %s278_s23 = scalar_lea.vmem %s277_s22, 256  ;;  %p279_p12 = scmp.lt.s32.totalorder %s437_s11, %s277_s22 }
  0x3a   : > { %p274_p9 = pnand %p273_p5, %p494_p6  ;;  %p280_p2 = scmp.lt.s32.totalorder %s278_s23, %s272_s21 }
  0x3c   : > { %p275_p10 = pneg %p274_p9  ;;  %p281_p3 = por %p280_p2, %p279_p12 }
  0x3e   : > { %p282_p4 = pnand %p281_p3, %p275_p10 }
  0x40   : > { %285 = shalt.err (!%p282_p4)
}
  0x41   : > { %s286_s24 = scalar_lea.hbm %s442_s19, 128  ;;  %s290_s27 = scalar_lea.hbm %s483_s1, 256 }
  0x42   : > { %p287_p7 = scmp.ne.s32.totalorder %s442_s19, %s286_s24  ;;  %p291_p13 = scmp.lt.u32.totalorder %s442_s19, %s483_s1 }
  0x43   : > { %p292_p1 = scmp.lt.u32.totalorder %s290_s27, %s286_s24  ;;  %p294_p5 = scmp.lt.u32.totalorder %s286_s24, %s442_s19 }
  0x44   : > { %p288_p8 = pnand %p287_p7, %p494_p6 }
  0x45   : > { %p293_p0 = por %p292_p1, %p291_p13 }
  0x46   : > { %p289_p11 = pneg %p288_p8 }
  0x47   : > { %p295_p9 = por %p294_p5, %p293_p0 }
  0x49   : > { %p296_p10 = pnand %p295_p9, %p289_p11 }
  0x4b   : > { %299 = shalt.err (!%p296_p10)
}
  0x4c   : > { %198 = dma.vmem_to_hbm [thread:$0]  (%p494_p6), %s437_s11, 128, %s442_s19, %s112_s20  }
  0x4d PF: > { %p210_p12 = scmp.ge.s32.totalorder %s338_s9, 2  ;;  %s137_s30 = sand.u32 1, %s326_s6  }
  0x4e   : > { %p495_p2 = scmp.ne.s32.totalorder %s488_s17, 0  ;;  %s138_s2 = scalar_lea.sflag [#allocation4], %s137_s30 }
  0x50   : > { %p205_p3 = pnand %p210_p12, %p495_p2 }
  0x52   : > { %321 = dma.done.wait (!%p205_p3), %s138_s2, 128  }
  0x53   : > { %323 = vsyncadd (!%p205_p3), %s138_s2, 4294967168  ;;  %p12_p4 = scmp.ge.s32.totalorder %s377_s12, 4   ;;  %s496_s6 = smov %s330_s7 }
  0x54   : > { %s497_s7 = smov %s334_s8  ;;  %s498_s8 = smov %s388_s15 }
  0x55   : > { %s499_s9 = smov %s377_s12  ;;  %14 = sbr.rel (!%p12_p4) target bundleno = 4 (0x4), region = 61 }
  0x5c   :  { %143 = vsyncpa [#allocation3], 1 }
  0x5d   :  { %145 = vsyncpa [#allocation3 + $0x1], 1 }
  0x5e   :  { %146 = vsyncpa [#allocation4], 1 }
  0x5f   :  { %148 = vsyncpa [#allocation4 + $0x1], 1 }

// kernel: tpu_custom_call.1
= control target key start
LH: loop header
LB: loop body
LE: loop exit
PB: predicated region body
PF: predicated region fallthrough
CT: control target
= control target key end

     0   :  { %12 = vsyncpa [#allocation3], 0  ;;  %s1620_s0 = inlined_call_operand.hbm [shape: f32[16,128], index: 0, kind: input, shape index: {}]   ;;  %s1621_s1 = inlined_call_operand.hbm [shape: f32[128,256], index: 1, kind: input, shape index: {}]   ;;  %s1622_s2 = inlined_call_operand.hbm [shape: f32[256,128], index: 2, kind: input, shape index: {}]   ;;  %s1623_s3 = inlined_call_operand.hbm [shape: f32[1,256], index: 3, kind: input, shape index: {}]   ;;  %s1624_s4 = inlined_call_operand.hbm [shape: f32[1,128], index: 4, kind: input, shape index: {}]   ;;  %s1625_s5 = inlined_call_operand.hbm [shape: f32[16,256], index: 5, kind: output, shape index: {0}]   ;;  %s1626_s6 = inlined_call_operand.hbm [shape: f32[16,128], index: 6, kind: output, shape index: {1}]  }
   0x1   :  { %14 = vsyncpa [#allocation3 + $0x1], 0 }
   0x2   :  { %15 = vsyncpa [#allocation6], 0 }
   0x3   :  { %16 = vsyncpa [#allocation9], 0 }
   0x4   :  { %17 = vsyncpa [#allocation4], 0 }
   0x5   :  { %19 = vsyncpa [#allocation4 + $0x1], 0 }
   0x6   :  { %20 = vsyncpa [#allocation13], 0 }
   0x7   :  { %22 = vsyncpa [#allocation13 + $0x1], 0  ;;  %s1282_s21 = smov 0   ;;  %s1284_s22 = smov 0  }
   0x8   :  { %s1286_s23 = smov 0   ;;  %s1288_s24 = smov 0  }
   0x9 LB: > { %s1235_s25 = smov [#allocation5]   ;;  %s1303_s27 = sadd.s32 4294967295, %s1233_s24   ;;  %s1233_s24 = sphi %s1288_s24, %s1650_s24   ;;  %s1229_s23 = sphi %s1286_s23, %s1649_s23   ;;  %s1225_s22 = sphi %s1284_s22, %s1648_s22   ;;  %s1221_s21 = sphi %s1282_s21, %s1647_s21  }
   0xa   : > { %s207_s26 = sshll.u32 %s1235_s25, 4  ;;  %p762_p0 = scmp.ge.s32.totalorder %s1233_s24, 1  ;;  %s1308_s26 = int_to_ptr.vmem [resolvable:$true] %s207_s26 }
   0xb   : > { %p1627_p1 = scmp.eq.s32.totalorder %s1303_s27, 0  ;;  %p195_p2 = scmp.lt.s32.totalorder %s1233_s24, 3 }
   0xc   : > { %s1236_s29 = smov [#allocation8]   ;;  %s1237_s8 = smov [#allocation7]  }
   0xd   : > { %p1310_p3 = pnand %p762_p0, %p195_p2  ;;  %s234_s30 = sshll.u32 %s1236_s29, 4  ;;  %s1323_s30 = int_to_ptr.vmem [resolvable:$true] %s234_s30 }
   0xe   : > { %s220_s9 = sshll.u32 %s1237_s8, 4  ;;  %s985_s12 = scalar_lea.hbm %s1621_s1, 4096  ;;  %s1325_s9 = int_to_ptr.vmem [resolvable:$true] %s220_s9 }
   0xf   : > { %s1630_s28 = scalar_select %p1310_p3, 1, 0 }
  0x10   : > { %p910_p5 = pneg %p1310_p3  ;;  %p986_p7 = scmp.ne.s32.totalorder %s1621_s1, %s985_s12 }
  0x11   : > { %p992_p11 = scmp.lt.u32.totalorder %s985_s12, %s1621_s1 }
  0x12   : > { %p1319_p6 = pnand %p910_p5, %p1627_p1 }
  0x14   : > { %p1335_p8 = pneg %p1319_p6 }
  0x16   : > { %p988_p9 = pnand %p1335_p8, %p986_p7 }
  0x18   : > { %p989_p10 = pneg %p988_p9 }
  0x1a   : > { %p994_p12 = pnand %p992_p11, %p989_p10 }
  0x1c   : > { %997 = shalt.err (!%p994_p12)
}
  0x1d   : > { %s998_s18 = scalar_lea.vmem %s1308_s26, 4096  ;;  %p1006_p5 = scmp.lt.s32.totalorder %s1308_s26, %s1308_s26 }
  0x1e   : > { %p999_p13 = scmp.ne.s32.totalorder %s1308_s26, %s998_s18  ;;  %p1007_p4 = scmp.lt.s32.totalorder %s998_s18, %s998_s18 }
  0x20   : > { %p1001_p0 = pnand %p999_p13, %p1335_p8  ;;  %p1008_p7 = por %p1007_p4, %p1006_p5 }
  0x22   : > { %p1002_p2 = pneg %p1001_p0 }
  0x24   : > { %p1009_p9 = pnand %p1008_p7, %p1002_p2 }
  0x26   : > { %1012 = shalt.err (!%p1009_p9)
}
  0x27   : > { %s1238_s19 = smov 256   ;;  %s1239_s20 = smov 16  }
  0x28   : > { %913 = dma.hbm_to_vmem [thread:$0]  (!%p1319_p6), %s1621_s1, 4096, %s1308_s26, [#allocation6], %s1238_s19, %s1238_s19, %s1239_s20  }
  0x29   : > { %s1013_s11 = scalar_lea.hbm %s1623_s3, 32 }
  0x2a   : > { %p1014_p4 = scmp.ne.s32.totalorder %s1623_s3, %s1013_s11  ;;  %p1020_p12 = scmp.lt.u32.totalorder %s1013_s11, %s1623_s3 }
  0x2c   : > { %p1016_p10 = pnand %p1014_p4, %p1335_p8 }
  0x2e   : > { %p1017_p11 = pneg %p1016_p10 }
  0x30   : > { %p1022_p13 = pnand %p1020_p12, %p1017_p11 }
  0x32   : > { %1025 = shalt.err (!%p1022_p13)
}
  0x33   : > { %s1026_s26 = scalar_lea.vmem %s1323_s30, 32  ;;  %p1034_p7 = scmp.lt.s32.totalorder %s1323_s30, %s1323_s30 }
  0x34   : > { %p1027_p0 = scmp.ne.s32.totalorder %s1323_s30, %s1026_s26  ;;  %p1035_p9 = scmp.lt.s32.totalorder %s1026_s26, %s1026_s26 }
  0x36   : > { %p1029_p2 = pnand %p1027_p0, %p1335_p8  ;;  %p1036_p4 = por %p1035_p9, %p1034_p7 }
  0x38   : > { %p1030_p5 = pneg %p1029_p2 }
  0x3a   : > { %p1037_p10 = pnand %p1036_p4, %p1030_p5 }
  0x3c   : > { %1040 = shalt.err (!%p1037_p10)
}
  0x3d   : > { %919 = dma.hbm_to_vmem [thread:$0]  (!%p1319_p6), %s1623_s3, 32, %s1323_s30, [#allocation9]  }
  0x3e   : > { %s1041_s25 = scalar_lea.hbm %s1622_s2, 4096 }
  0x3f   : > { %p1042_p11 = scmp.ne.s32.totalorder %s1622_s2, %s1041_s25  ;;  %p1048_p0 = scmp.lt.u32.totalorder %s1041_s25, %s1622_s2 }
  0x41   : > { %p1044_p12 = pnand %p1042_p11, %p1335_p8 }
  0x43   : > { %p1045_p13 = pneg %p1044_p12 }
  0x45   : > { %p1050_p2 = pnand %p1048_p0, %p1045_p13 }
  0x47   : > { %1053 = shalt.err (!%p1050_p2)
}
  0x48   : > { %s1054_s30 = scalar_lea.vmem %s1325_s9, 4096  ;;  %p1062_p4 = scmp.lt.s32.totalorder %s1325_s9, %s1325_s9 }
  0x49   : > { %p1055_p5 = scmp.ne.s32.totalorder %s1325_s9, %s1054_s30  ;;  %p1063_p10 = scmp.lt.s32.totalorder %s1054_s30, %s1054_s30 }
  0x4b   : > { %p1057_p7 = pnand %p1055_p5, %p1335_p8  ;;  %p1064_p11 = por %p1063_p10, %p1062_p4 }
  0x4d   : > { %p1058_p9 = pneg %p1057_p7 }
  0x4f   : > { %p1065_p12 = pnand %p1064_p11, %p1058_p9 }
  0x51   : > { %1068 = shalt.err (!%p1065_p12)
}
  0x52   : > { %s1240_s12 = smov 128   ;;  %s1241_s13 = smov 8  }
  0x53   : > { %916 = dma.hbm_to_vmem [thread:$0]  (!%p1319_p6), %s1622_s2, 4096, %s1325_s9, [#allocation6], %s1240_s12, %s1240_s12, %s1241_s13  }
  0x54   : > { %s1242_s26 = smov [#allocation10]   ;;  %s1069_s20 = scalar_lea.hbm %s1624_s4, 16 }
  0x55   : > { %s245_s17 = sshll.u32 %s1242_s26, 4  ;;  %p1070_p13 = scmp.ne.s32.totalorder %s1624_s4, %s1069_s20  ;;  %s246_s17 = int_to_ptr.vmem [resolvable:$true] %s245_s17 }
  0x56   : > { %p1076_p5 = scmp.lt.u32.totalorder %s1069_s20, %s1624_s4 }
  0x57   : > { %p1072_p0 = pnand %p1070_p13, %p1335_p8 }
  0x59   : > { %p1073_p2 = pneg %p1072_p0 }
  0x5b   : > { %p1078_p7 = pnand %p1076_p5, %p1073_p2 }
  0x5d   : > { %1081 = shalt.err (!%p1078_p7)
}
  0x5e   : > { %s1082_s9 = scalar_lea.vmem %s246_s17, 16  ;;  %s1089_s11 = scalar_lea.vmem %s246_s17, 32 }
  0x5f   : > { %p1083_p9 = scmp.ne.s32.totalorder %s246_s17, %s1082_s9  ;;  %p1090_p11 = scmp.lt.s32.totalorder %s246_s17, %s246_s17 }
  0x60   : > { %p1091_p12 = scmp.lt.s32.totalorder %s1089_s11, %s1082_s9 }
  0x61   : > { %p1085_p4 = pnand %p1083_p9, %p1335_p8 }
  0x62   : > { %p1092_p1 = por %p1091_p12, %p1090_p11 }
  0x63   : > { %p1086_p10 = pneg %p1085_p4 }
  0x65   : > { %p1093_p3 = pnand %p1092_p1, %p1086_p10 }
  0x67   : > { %1096 = shalt.err (!%p1093_p3)
}
  0x68   : > { %922 = dma.hbm_to_vmem [thread:$0]  (!%p1319_p6), %s1624_s4, 16, %s246_s17, [#allocation9]  }
  0x69   : > { %s761_s15 = sadd.s32 4294967294, %s1233_s24   ;;  %s1422_s7 = sadd.s32 1, %s1233_s24  }
  0x6a   : > { %s32_s13 = ssub.s32 %s1233_s24, %s1422_s7  ;;  %s35_s14 = sadd.s32 1, %s1229_s23 }
  0x6b   : > { %p33_p1 = scmp.eq.s32.totalorder %s32_s13, 0  ;;  %p42_p3 = scmp.ne.s32.totalorder %s1229_s23, %s1225_s22 }
  0x6c   : > { %p43_p8 = scmp.eq.s32.totalorder %s1233_s24, 0  ;;  %p48_p13 = scmp.ne.s32.totalorder %s1225_s22, %s1221_s21 }
  0x6d   : > { %s1433_s16 = scalar_select %p33_p1, %s1229_s23, %s35_s14  }
  0x6e   : > { %p1435_p0 = por %p43_p8, %p42_p3  ;;  %p1634_p2 = scmp.eq.s32.totalorder %s1303_s27, 0 }
  0x6f   : > { %p156_p5 = scmp.eq.s32.totalorder %s1303_s27, 1  ;;  %p162_p7 = scmp.eq.s32.totalorder %s761_s15, 1 }
  0x70   : > { %p1441_p6 = por %p1634_p2, %p48_p13  ;;  %p938_p9 = scmp.lt.s32.totalorder %s1233_s24, 2 }
  0x71   : > { %s256_s18 = sand.u32 1, %s1229_s23   ;;  %p1448_p4 = por %p156_p5, %p42_p3 }
  0x72   : > { %p1452_p10 = por %p162_p7, %p48_p13  ;;  %s768_s25 = sshll.u32 %s256_s18, 3 }
  0x73   : > { %s1636_s19 = scalar_select %p1448_p4, 1, 0 }
  0x74   : > { %s1637_s20 = scalar_select %p1452_p10, 1, 0 }
  0x75   : > { %s769_s29 = sshll.u32 %s1233_s24, 7  ;;  %s260_s11 = scalar_lea.vmem [#allocation2], %s768_s25 }
  0x76   : > { %s1460_s9 = scalar_lea.hbm %s1620_s0, %s769_s29  ;;  %s267_s30 = sshll.u32 %s260_s11, 4  ;;  %s1462_s30 = int_to_ptr.vmem [resolvable:$true] %s267_s30 }
  0x77   : > { %p1466_p11 = pnand %p938_p9, %p1435_p0  ;;  %s257_s15 = scalar_lea.sflag [#allocation3], %s256_s18 }
  0x78   : > { %s1097_s13 = scalar_lea.hbm %s1460_s9, 128  ;;  %s1102_s29 = scalar_lea.hbm %s1620_s0, 256 }
  0x79   : > { %p1098_p12 = scmp.ne.s32.totalorder %s1460_s9, %s1097_s13  ;;  %p1099_p1 = pneg %p1466_p11 }
  0x7a   : > { %p1103_p13 = scmp.lt.u32.totalorder %s1460_s9, %s1620_s0  ;;  %p1104_p0 = scmp.lt.u32.totalorder %s1102_s29, %s1097_s13 }
  0x7b   : > { %p1100_p3 = pnand %p1099_p1, %p1098_p12  ;;  %p1106_p5 = scmp.lt.u32.totalorder %s1097_s13, %s1460_s9 }
  0x7c   : > { %p1105_p2 = por %p1104_p0, %p1103_p13 }
  0x7d   : > { %p1101_p8 = pneg %p1100_p3 }
  0x7e   : > { %p1107_p7 = por %p1106_p5, %p1105_p2 }
  0x80   : > { %p1108_p9 = pnand %p1107_p7, %p1101_p8 }
  0x82   : > { %1111 = shalt.err (!%p1108_p9)
}
  0x83   : > { %s1112_s18 = scalar_lea.vmem %s1462_s30, 128  ;;  %s1243_s10 = smov [#allocation2]  }
  0x84   : > { %p1113_p12 = scmp.ne.s32.totalorder %s1462_s30, %s1112_s18  ;;  %s1117_s11 = sshll.u32 %s1243_s10, 4  ;;  %s1118_s11 = int_to_ptr.vmem [resolvable:$false] %s1117_s11 }
  0x85   : > { %s1119_s14 = scalar_lea.vmem %s1118_s11, 256  ;;  %p1120_p4 = scmp.lt.s32.totalorder %s1462_s30, %s1118_s11 }
  0x86   : > { %p1115_p3 = pnand %p1113_p12, %p1099_p1  ;;  %p1121_p13 = scmp.lt.s32.totalorder %s1119_s14, %s1112_s18 }
  0x88   : > { %p1116_p10 = pneg %p1115_p3  ;;  %p1122_p0 = por %p1121_p13, %p1120_p4 }
  0x8a   : > { %p1123_p2 = pnand %p1122_p0, %p1116_p10 }
  0x8c   : > { %1126 = shalt.err (!%p1123_p2)
}
  0x8d   : > { %926 = dma.hbm_to_vmem [thread:$0]  (!%p1466_p11), %s1460_s9, 128, %s1462_s30, %s257_s15  }
  0x8e   : > { %p1639_p8 = scmp.ne.s32.totalorder %s1630_s28, 0 }
  0x8f   : > { %s1498_s13 = sand.u32 (!%p1639_p8), 1, %s1225_s22  }
  0x90   : > { %276 = sbr.rel (%p1639_p8) target bundleno = 1223 (0x4c7), region = 40  ;;  %s771_s25 = sshll.u32 (!%p1639_p8), %s1498_s13, 3 }
  0x91   : > { %s279_s29 = scalar_lea.sflag (!%p1639_p8), [#allocation3], %s1498_s13  ;;  %s1504_s26 = scalar_lea.vmem (!%p1639_p8), [#allocation2], %s771_s25 }
  0x97   : > { %1200 = dma.done.wait (%p1441_p6), %s279_s29, 128  }
  0x98   : > { %1202 = vsyncadd (%p1441_p6), %s279_s29, 4294967168  ;;  %p1640_p4 = scmp.eq.s32.totalorder %s1303_s27, 0 }
  0x9a   : > { %1204 = dma.done.wait (%p1640_p4), [#allocation6], 8192   ;;  %p1641_p10 = pmov %p1640_p4 }
  0x9b   : > { %p1642_p11 = pmov %p1640_p4 }
  0x9c   : > { %1206 = vsyncadd (%p1641_p10), [#allocation6], 4294959104 }
  0x9d   : > { %1208 = dma.done.wait (%p1642_p11), [#allocation9], 48   ;;  %p1643_p1 = pmov %p1640_p4 }
  0x9e   : > { %v1244_v0 = vmov 0.0   ;;  %v334_v1 = vld [vmem:[#allocation5 + $0x8] sm:$0xff]  ;;  %v336_v2 = vld [vmem:[#allocation5 + $0x18] sm:$0xff]  ;;  %v333_v3 = vld [vmem:[#allocation5] sm:$0xff]  ;;  %v367_v50 = vlaneseq  ;;  %s776_s28 = sshll.u32 %s1498_s13, 4  ;;  %s788_s30 = sshll.u32 %s1303_s27, 8 }
  0x9f   : > { %1210 = vsyncadd (%p1643_p1), [#allocation9], 4294967248  ;;  %441 = vmatprep.mubr.f32.mxu0 %v1244_v0  ;;  %v824_v4 = vpack.c.bf16 %v336_v2, %v334_v1  ;;  %v335_v5 = vld [vmem:[#allocation5 + $0x10] sm:$0xff]  ;;  %v338_v6 = vld [vmem:[#allocation5 + $0x28] sm:$0xff]  ;;  %s324_s17 = scalar_lea.vmem [#allocation11], %s776_s28  ;;  %s1550_s8 = scalar_lea.hbm %s1625_s5, %s788_s30 }
  0xa0   : > { %v340_v7 = vld [vmem:[#allocation5 + $0x38] sm:$0xff]  ;;  %v826_v8 = vpack.c.bf16 %v335_v5, %v333_v3  ;;  %v337_v10 = vld [vmem:[#allocation5 + $0x20] sm:$0xff]  ;;  %v339_v11 = vld [vmem:[#allocation5 + $0x30] sm:$0xff]  ;;  %v368_v51 = vshrl.u32 %v367_v50, 7  ;;  %s608_s9 = sshll.u32 %s324_s17, 4  ;;  %s589_s18 = scalar_lea.sflag [#allocation4], %s1498_s13  ;;  %s609_s9 = int_to_ptr.vmem [resolvable:$true] %s608_s9 }
  0xa1   : > { %v828_v9 = vpack.c.bf16 %v340_v7, %v338_v6  ;;  %v342_v12 = vld [vmem:[#allocation5 + $0x48] sm:$0xff]  ;;  %825 = vmatprep.subr.bf16.mxu0 %v824_v4  ;;  %v344_v13 = vld [vmem:[#allocation5 + $0x58] sm:$0xff]  ;;  %v830_v14 = vpack.c.bf16 %v339_v11, %v337_v10  ;;  %v341_v16 = vld [vmem:[#allocation5 + $0x40] sm:$0xff]  ;;  %s1127_s10 = scalar_lea.vmem %s609_s9, 256  ;;  %p1644_p5 = scmp.ne.s32.totalorder %s1636_s19, 0 }
  0xa2   : > { %827 = vmatpush1.bf16.msra.mxu0 %v826_v8  ;;  %v832_v15 = vpack.c.bf16 %v344_v13, %v342_v12  ;;  %v343_v17 = vld [vmem:[#allocation5 + $0x50] sm:$0xff]  ;;  %v346_v18 = vld [vmem:[#allocation5 + $0x68] sm:$0xff]  ;;  %v348_v19 = vld [vmem:[#allocation5 + $0x78] sm:$0xff]  ;;  %v369_v52 = vsub.s32 0, %v368_v51  ;;  %v373_v54 = vsub.s32 1, %v368_v51  ;;  %p1128_p6 = scmp.ne.s32.totalorder %s609_s9, %s1127_s10  ;;  %s1245_s11 = smov [#allocation11]  }
  0xa3   : > { %829 = vmatprep.subr.bf16.mxu0 %v828_v9  ;;  %v834_v20 = vpack.c.bf16 %v343_v17, %v341_v16  ;;  %v836_v21 = vpack.c.bf16 %v348_v19, %v346_v18  ;;  %v345_v22 = vld [vmem:[#allocation5 + $0x60] sm:$0xff]  ;;  %v347_v23 = vld [vmem:[#allocation5 + $0x70] sm:$0xff]  ;;  %v350_v24 = vld [vmem:[#allocation5 + $0x88] sm:$0xff]  ;;  %s1131_s14 = sshll.u32 %s1245_s11, 4  ;;  %s1132_s14 = int_to_ptr.vmem [resolvable:$false] %s1131_s14 }
  0xa4   : > { %v352_v25 = vld [vmem:[#allocation5 + $0x98] sm:$0xff]  ;;  %v838_v26 = vpack.c.bf16 %v347_v23, %v345_v22  ;;  %v349_v28 = vld [vmem:[#allocation5 + $0x80] sm:$0xff]  ;;  %v351_v29 = vld [vmem:[#allocation5 + $0x90] sm:$0xff]  ;;  %p1129_p7 = pnand %p1128_p6, %p1644_p5  ;;  %s1133_s29 = scalar_lea.vmem %s1132_s14, 512 }
  0xa5   : > { %v840_v27 = vpack.c.bf16 %v352_v25, %v350_v24  ;;  %v354_v30 = vld [vmem:[#allocation5 + $0xa8] sm:$0xff]  ;;  %v356_v31 = vld [vmem:[#allocation5 + $0xb8] sm:$0xff]  ;;  %v842_v32 = vpack.c.bf16 %v351_v29, %v349_v28  ;;  %v353_v34 = vld [vmem:[#allocation5 + $0xa0] sm:$0xff]  ;;  %p1134_p12 = scmp.lt.s32.totalorder %s609_s9, %s1132_s14  ;;  %p1135_p3 = scmp.lt.s32.totalorder %s1133_s29, %s1127_s10 }
  0xa6   : > { %831 = vmatpush1.bf16.msra.mxu0 %v830_v14  ;;  %v844_v33 = vpack.c.bf16 %v356_v31, %v354_v30  ;;  %v355_v35 = vld [vmem:[#allocation5 + $0xb0] sm:$0xff]  ;;  %v358_v36 = vld [vmem:[#allocation5 + $0xc8] sm:$0xff]  ;;  %v360_v37 = vld [vmem:[#allocation5 + $0xd8] sm:$0xff]  ;;  %p1130_p9 = pneg %p1129_p7 }
  0xa7   : > { %833 = vmatprep.subr.bf16.mxu0 %v832_v15  ;;  %v846_v38 = vpack.c.bf16 %v355_v35, %v353_v34  ;;  %v848_v39 = vpack.c.bf16 %v360_v37, %v358_v36  ;;  %v357_v40 = vld [vmem:[#allocation5 + $0xc0] sm:$0xff]  ;;  %v359_v41 = vld [vmem:[#allocation5 + $0xd0] sm:$0xff]  ;;  %v362_v42 = vld [vmem:[#allocation5 + $0xe8] sm:$0xff]  ;;  %p1136_p13 = por %p1135_p3, %p1134_p12 }
  0xa8   : > { %v364_v43 = vld [vmem:[#allocation5 + $0xf8] sm:$0xff]  ;;  %v850_v44 = vpack.c.bf16 %v359_v41, %v357_v40  ;;  %v361_v46 = vld [vmem:[#allocation5 + $0xe0] sm:$0xff]  ;;  %v363_v47 = vld [vmem:[#allocation5 + $0xf0] sm:$0xff] }
  0xa9   : > { %v852_v45 = vpack.c.bf16 %v364_v43, %v362_v42  ;;  %v854_v48 = vpack.c.bf16 %v363_v47, %v361_v46  ;;  %v332_v49 = vld [vmem:[%s1504_s26] sm:$0xff]  ;;  %v365_v53 = vld [vmem:[#allocation8] sm:$0x3]  ;;  %v495_v7 = vld [vmem:[#allocation7 + $0x88] sm:$0xff]  ;;  %p1137_p0 = pnand %p1136_p13, %p1130_p9 }
  0xaa   : > { %835 = vmatpush1.bf16.msra.mxu0 %v834_v20  ;;  %v370_v55 = vrot.slane %v365_v53, %v369_v52  ;;  %v374_v56 = vrot.slane %v365_v53, %v373_v54  ;;  %v494_v6 = vld [vmem:[#allocation7 + $0x80] sm:$0xff]  ;;  %v479_v10 = vld [vmem:[#allocation7 + $0x8] sm:$0xff]  ;;  %v496_v11 = vld [vmem:[#allocation7 + $0x90] sm:$0xff] }
  0xab   : > { %837 = vmatprep.subr.bf16.mxu0 %v836_v21  ;;  %v478_v8 = vld [vmem:[#allocation7] sm:$0xff]  ;;  %v856_v9 = vpack.c.bf16 %v495_v7, %v494_v6  ;;  %v497_v12 = vld [vmem:[#allocation7 + $0x98] sm:$0xff]  ;;  %v480_v15 = vld [vmem:[#allocation7 + $0x10] sm:$0xff] }
  0xac   : > { %v858_v13 = vpack.c.bf16 %v479_v10, %v478_v8  ;;  %v860_v14 = vpack.c.bf16 %v497_v12, %v496_v11  ;;  %v481_v16 = vld [vmem:[#allocation7 + $0x18] sm:$0xff]  ;;  %v498_v17 = vld [vmem:[#allocation7 + $0xa0] sm:$0xff]  ;;  %v499_v18 = vld [vmem:[#allocation7 + $0xa8] sm:$0xff] }
  0xad   : > { %857 = vmatprep.subr.bf16.mxu1 %v856_v9  ;;  %v862_v19 = vpack.c.bf16 %v481_v16, %v480_v15  ;;  %v864_v20 = vpack.c.bf16 %v499_v18, %v498_v17  ;;  %v482_v21 = vld [vmem:[#allocation7 + $0x20] sm:$0xff]  ;;  %v483_v22 = vld [vmem:[#allocation7 + $0x28] sm:$0xff]  ;;  %v500_v23 = vld [vmem:[#allocation7 + $0xb0] sm:$0xff] }
  0xae   : > { %839 = vmatpush1.bf16.msra.mxu0 %v838_v26  ;;  %859 = vmatpush3.bf16.msra.mxu1 %v858_v13  ;;  %v501_v24 = vld [vmem:[#allocation7 + $0xb8] sm:$0xff]  ;;  %v866_v25 = vpack.c.bf16 %v483_v22, %v482_v21  ;;  %v502_v29 = vld [vmem:[#allocation7 + $0xc0] sm:$0xff]  ;;  %v503_v30 = vld [vmem:[#allocation7 + $0xc8] sm:$0xff] }
  0xaf   : > { %841 = vmatprep.subr.bf16.mxu0 %v840_v27  ;;  %861 = vmatprep.subr.bf16.mxu1 %v860_v14  ;;  %v868_v26 = vpack.c.bf16 %v501_v24, %v500_v23  ;;  %v484_v27 = vld [vmem:[#allocation7 + $0x30] sm:$0xff]  ;;  %v485_v28 = vld [vmem:[#allocation7 + $0x38] sm:$0xff]  ;;  %v487_v34 = vld [vmem:[#allocation7 + $0x48] sm:$0xff] }
  0xb0   : > { %v870_v31 = vpack.c.bf16 %v485_v28, %v484_v27  ;;  %v504_v35 = vld [vmem:[#allocation7 + $0xd0] sm:$0xff]  ;;  %v505_v36 = vld [vmem:[#allocation7 + $0xd8] sm:$0xff]  ;;  %v506_v41 = vld [vmem:[#allocation7 + $0xe0] sm:$0xff] }
  0xb1   : > { %v489_v40 = vld [vmem:[#allocation7 + $0x58] sm:$0xff]  ;;  %v507_v42 = vld [vmem:[#allocation7 + $0xe8] sm:$0xff]  ;;  %v508_v47 = vld [vmem:[#allocation7 + $0xf0] sm:$0xff] }
  0xb2   : > { %843 = vmatpush1.bf16.msra.mxu0 %v842_v32  ;;  %863 = vmatpush3.bf16.msra.mxu1 %v862_v19  ;;  %v872_v32 = vpack.c.bf16 %v503_v30, %v502_v29  ;;  %v491_v46 = vld [vmem:[#allocation7 + $0x68] sm:$0xff]  ;;  %v492_v51 = vld [vmem:[#allocation7 + $0x70] sm:$0xff]  ;;  %v493_v52 = vld [vmem:[#allocation7 + $0x78] sm:$0xff] }
  0xb3   : > { %845 = vmatprep.subr.bf16.mxu0 %v844_v33  ;;  %865 = vmatprep.subr.bf16.mxu1 %v864_v20  ;;  %v486_v33 = vld [vmem:[#allocation7 + $0x40] sm:$0xff]  ;;  %v886_v53 = vpack.c.bf16 %v493_v52, %v492_v51 }
  0xb4   : > { %v874_v37 = vpack.c.bf16 %v487_v34, %v486_v33 }
  0xb6   : > { %847 = vmatpush1.bf16.msra.mxu0 %v846_v38  ;;  %867 = vmatpush3.bf16.msra.mxu1 %v866_v25  ;;  %v876_v38 = vpack.c.bf16 %v505_v36, %v504_v35 }
  0xb7   : > { %849 = vmatprep.subr.bf16.mxu0 %v848_v39  ;;  %869 = vmatprep.subr.bf16.mxu1 %v868_v26  ;;  %v488_v39 = vld [vmem:[#allocation7 + $0x50] sm:$0xff] }
  0xb8   : > { %v878_v43 = vpack.c.bf16 %v489_v40, %v488_v39 }
  0xba   : > { %851 = vmatpush1.bf16.msra.mxu0 %v850_v44  ;;  %871 = vmatpush3.bf16.msra.mxu1 %v870_v31  ;;  %v880_v44 = vpack.c.bf16 %v507_v42, %v506_v41 }
  0xbb   : > { %853 = vmatprep.subr.bf16.mxu0 %v852_v45  ;;  %873 = vmatprep.subr.bf16.mxu1 %v872_v32  ;;  %v490_v45 = vld [vmem:[#allocation7 + $0x60] sm:$0xff] }
  0xbe   : > { %855 = vmatpush1.bf16.msra.mxu0 %v854_v48  ;;  %875 = vmatpush3.bf16.msra.mxu1 %v874_v37  ;;  %v509_v48 = vld [vmem:[#allocation7 + $0xf8] sm:$0xff] }
  0xbf   : > { %877 = vmatprep.subr.bf16.mxu1 %v876_v38  ;;  %v884_v50 = vpack.c.bf16 %v509_v48, %v508_v47 }
  0xc1   : > { %442 = vmatmul.mubr.f32.vlgmr.msra.gmra.mrb[0].mxu0 %v332_v49  ;;  %v882_v49 = vpack.c.bf16 %v491_v46, %v490_v45 }
  0xc2   : > { %879 = vmatpush3.bf16.msra.mxu1 %v878_v43 }
  0xc3   : > { %881 = vmatprep.subr.bf16.mxu1 %v880_v44 }
  0xc6   : > { %883 = vmatpush3.bf16.msra.mxu1 %v882_v49 }
  0xc7   : > { %885 = vmatprep.subr.bf16.mxu1 %v884_v50 }
  0xca   : > { %887 = vmatpush3.bf16.msra.mxu1 %v886_v53 }
 0x194   : > { %v443_v57 = vpop.f32.mrb[0].mxu0 }
 0x195   : > { %v1519_v58 = vadd.f32 %v443_v57, %v370_v55  ;;  %v445_v59 = vpop.f32.mrb[1].mxu0 }
 0x196   : > { %v1521_v60 = vadd.f32 %v445_v59, %v374_v56 }
 0x198   : > { %v448_v61 = vmax.f32 %v1519_v58, %v1521_v60 }
 0x19a   : > { %449 = vmax.xlane.f32.xlu0 %v448_v61 }
 0x227   : > { %v450_v62 = vpop.xlane.xlu0 %449 }
 0x228   : > { %vm451_vm0 = vcmp.eq.f32.partialorder %v1519_v58, %v450_v62  ;;  %vm452_vm1 = vcmp.eq.f32.partialorder %v1521_v60, %v450_v62 }
 0x229   : > { %v453_v63 = vsel %vm451_vm0, -inf, %v1519_v58  ;;  %v454_v0 = vsel %vm452_vm1, -inf, %v1521_v60 }
 0x22a   : > { %v455_v1 = vmax.f32 %v453_v63, %v454_v0 }
 0x22c   : > { %456 = vmax.xlane.f32.xlu0 %v455_v1 }
 0x2b9   : > { %v457_v2 = vpop.xlane.xlu0 %456 }
 0x2ba   : > { %vm458_vm2 = vcmp.eq.f32.partialorder %v453_v63, %v457_v2  ;;  %vm459_vm3 = vcmp.eq.f32.partialorder %v454_v0, %v457_v2 }
 0x2bb   : > { %v1529_v3 = vsel %vm458_vm2, -inf, %v453_v63  ;;  %v1531_v4 = vsel %vm459_vm3, -inf, %v454_v0 }
 0x2bc   : > { %v462_v5 = vmax.f32 %v1529_v3, %v1531_v4 }
 0x2be   : > { %463 = vmax.xlane.f32.xlu1 %v462_v5 }
 0x34b   : > { %v464_v54 = vpop.xlane.xlu1 %463 }
 0x34c   : > { %vm465_vm4 = vcmp.eq.f32.partialorder %v1529_v3, %v464_v54  ;;  %vm466_vm5 = vcmp.eq.f32.partialorder %v1531_v4, %v464_v54 }
 0x34d   : > { %v467_v55 = vsel %vm465_vm4, -inf, %v1529_v3  ;;  %v468_v56 = vsel %vm466_vm5, -inf, %v1531_v4 }
 0x34e   : > { %v469_v57 = vmax.f32 %v467_v55, %v468_v56 }
 0x350   : > { %470 = vmax.xlane.f32.xlu1 %v469_v57 }
 0x3dd   : > { %v471_v59 = vpop.xlane.xlu1 %470 }
 0x3de   : > { %vm472_vm6 = vcmp.ge.f32.partialorder %v1519_v58, %v471_v59  ;;  %vm473_vm7 = vcmp.ge.f32.partialorder %v1521_v60, %v471_v59 }
 0x3df   : > { %v474_v61 = vsel %vm472_vm6, %v1519_v58, 0.0  ;;  %v475_v62 = vsel %vm473_vm7, %v1521_v60, 0.0  ;;  %779 = vmatprep.mubr.msk.f32.mxu1 %vm473_vm7, %v1521_v60 }
 0x3e0   : > { %476 = vst [vmem:[%s324_s17] sm:$0xff] %v474_v61  ;;  %477 = vst [vmem:[%s324_s17 + $0x8] sm:$0xff] %v475_v62  ;;  %780 = vmatmul.mubr.msk.f32.vlgmr.msra.gmra.mrb[0].mxu1 %vm472_vm6, %v1519_v58 }
 0x3e1   : > { %1140 = shalt.err (!%p1137_p0)
}
 0x3e2   : > { %s1141_s26 = scalar_lea.hbm %s1550_s8, 256  ;;  %s1145_s30 = scalar_lea.hbm %s1625_s5, 512 }
 0x3e3   : > { %p1142_p2 = scmp.ne.s32.totalorder %s1550_s8, %s1141_s26  ;;  %p1146_p10 = scmp.lt.u32.totalorder %s1550_s8, %s1625_s5 }
 0x3e4   : > { %p1147_p11 = scmp.lt.u32.totalorder %s1145_s30, %s1141_s26  ;;  %p1149_p6 = scmp.lt.u32.totalorder %s1141_s26, %s1550_s8 }
 0x3e5   : > { %p1143_p8 = pnand %p1142_p2, %p1644_p5 }
 0x3e6   : > { %p1148_p1 = por %p1147_p11, %p1146_p10 }
 0x3e7   : > { %p1144_p4 = pneg %p1143_p8 }
 0x3e8   : > { %p1150_p7 = por %p1149_p6, %p1148_p1 }
 0x3ea   : > { %p1151_p9 = pnand %p1150_p7, %p1144_p4 }
 0x3ec   : > { %1154 = shalt.err (!%p1151_p9)
}
 0x3ed   : > { %906 = dma.vmem_to_hbm [thread:$0]  (%p1644_p5), %s609_s9, 256, %s1550_s8, %s589_s18   ;;  %v778_v60 = vld [vmem:[#allocation10] ss:$0 sm:$0xff] }
 0x3ee   : > { %s785_s10 = sshll.u32 %s1303_s27, 7  ;;  %s331_s11 = scalar_lea.vmem [#allocation12], %s771_s25 }
 0x3ef   : > { %s621_s14 = sshll.u32 %s331_s11, 4  ;;  %s1576_s28 = scalar_lea.hbm %s1626_s6, %s785_s10  ;;  %s1578_s14 = int_to_ptr.vmem [resolvable:$true] %s621_s14 }
 0x3f0   : > { %s594_s9 = scalar_lea.sflag [#allocation13], %s1498_s13  ;;  %s1155_s8 = scalar_lea.vmem %s1578_s14, 128 }
 0x3f1   : > { %p1156_p12 = scmp.ne.s32.totalorder %s1578_s14, %s1155_s8  ;;  %s1246_s27 = smov [#allocation12]  }
 0x3f2   : > { %s1159_s25 = sshll.u32 %s1246_s27, 4  ;;  %s1160_s25 = int_to_ptr.vmem [resolvable:$false] %s1159_s25 }
 0x3f3   : > { %p1157_p3 = pnand %p1156_p12, %p1644_p5  ;;  %s1161_s18 = scalar_lea.vmem %s1160_s25, 256 }
 0x3f4   : > { %p1162_p0 = scmp.lt.s32.totalorder %s1578_s14, %s1160_s25  ;;  %p1163_p2 = scmp.lt.s32.totalorder %s1161_s18, %s1155_s8 }
 0x3f5   : > { %p1158_p13 = pneg %p1157_p3 }
 0x3f6   : > { %p1164_p8 = por %p1163_p2, %p1162_p0 }
 0x3f8   : > { %p1165_p4 = pnand %p1164_p8, %p1158_p13 }
 0x4b3   : > { %v821_v58 = vpop.f32.mrb[0].mxu1 }
 0x4b4   : > { %v822_v63 = vpop.f32.mrb[1].mxu1 }
 0x4b5   : > { %v823_v0 = vadd.f32 %v822_v63, %v821_v58 }
 0x4b7   : > { %v584_v1 = vadd.f32 %v823_v0, %v778_v60 }
 0x4b9   : > { %587 = vst [vmem:[%s331_s11] sm:$0xff] %v584_v1 }
 0x4ba   : > { %1168 = shalt.err (!%p1165_p4)
}
 0x4bb   : > { %s1169_s13 = scalar_lea.hbm %s1576_s28, 128  ;;  %s1173_s12 = scalar_lea.hbm %s1626_s6, 256 }
 0x4bc   : > { %p1170_p10 = scmp.ne.s32.totalorder %s1576_s28, %s1169_s13  ;;  %p1174_p6 = scmp.lt.u32.totalorder %s1576_s28, %s1626_s6 }
 0x4bd   : > { %p1175_p7 = scmp.lt.u32.totalorder %s1173_s12, %s1169_s13  ;;  %p1177_p12 = scmp.lt.u32.totalorder %s1169_s13, %s1576_s28 }
 0x4be   : > { %p1171_p11 = pnand %p1170_p10, %p1644_p5 }
 0x4bf   : > { %p1176_p9 = por %p1175_p7, %p1174_p6 }
 0x4c0   : > { %p1172_p1 = pneg %p1171_p11 }
 0x4c1   : > { %p1178_p3 = por %p1177_p12, %p1176_p9 }
 0x4c3   : > { %p1179_p13 = pnand %p1178_p3, %p1172_p1 }
 0x4c5   : > { %1182 = shalt.err (!%p1179_p13)
}
 0x4c6   : > { %907 = dma.vmem_to_hbm [thread:$0]  (%p1644_p5), %s1578_s14, 128, %s1576_s28, %s594_s9  }
 0x4c7 PF: > { %s633_s11 = sand.u32 1, %s1221_s21   ;;  %p1645_p0 = scmp.ne.s32.totalorder %s1637_s20, 0 }
 0x4c8   : > { %p1646_p2 = scmp.ge.s32.totalorder %s1233_s24, 2  ;;  %s634_s29 = scalar_lea.sflag [#allocation4], %s633_s11 }
 0x4ca   : > { %p928_p8 = pnand %p1646_p2, %p1645_p0 }
 0x4cc   : > { %1212 = dma.done.wait (!%p928_p8), %s634_s29, 256  }
 0x4cd   : > { %1214 = vsyncadd (!%p928_p8), %s634_s29, 4294967040  ;;  %s643_s26 = scalar_lea.sflag [#allocation13], %s633_s11 }
 0x4ce   : > { %1216 = dma.done.wait (!%p928_p8), %s643_s26, 128  }
 0x4cf   : > { %1218 = vsyncadd (!%p928_p8), %s643_s26, 4294967168  ;;  %p25_p5 = scmp.ge.s32.totalorder %s1422_s7, 4   ;;  %s1647_s21 = smov %s1225_s22 }
 0x4d0   : > { %s1648_s22 = smov %s1229_s23  ;;  %s1649_s23 = smov %s1433_s16 }
 0x4d1   : > { %s1650_s24 = smov %s1422_s7  ;;  %27 = sbr.rel (!%p25_p5) target bundleno = 9 (0x9), region = 118 }
 0x4d8   :  { %648 = vsyncpa [#allocation3], 1 }
 0x4d9   :  { %650 = vsyncpa [#allocation3 + $0x1], 1 }
 0x4da   :  { %651 = vsyncpa [#allocation6], 1 }
 0x4db   :  { %652 = vsyncpa [#allocation9], 1 }
 0x4dc   :  { %653 = vsyncpa [#allocation4], 1 }
 0x4dd   :  { %655 = vsyncpa [#allocation4 + $0x1], 1 }
 0x4de   :  { %656 = vsyncpa [#allocation13], 1 }
 0x4df   :  { %658 = vsyncpa [#allocation13 + $0x1], 1 }

</bundles_post_ra>
